<compile_context>
chip_gen: v6e
topology: v6e:2x2x1
jax: 0.10.0
libtpu: 0.0.40
codegen_flags: <defaults>
</compile_context>

<pallas_src>
import functools

import jax
import jax.numpy as jnp
from jax.experimental import pallas as pl
from jax.experimental.pallas import tpu as pltpu


# ---------------------------------------------------------------------------
# Kernels
# ---------------------------------------------------------------------------

def _softmax_onepass_kernel(tar_ref, refs_ref, out_ref, *, n_valid,
                            approx_recip):
    """Fused single-pass softmax affinity: whole ref axis in one lane tile.

    Grid: (ctx, tar_tiles).  One MXU matmul, one EUP exp per element, one
    exact/approx reciprocal per row.  `n_valid` (static) masks padded ref
    columns to -inf before the softmax (None when no padding).
    """
    s = jnp.dot(tar_ref[...], refs_ref[...],
                preferred_element_type=jnp.float32)            # [tm, tn]
    if n_valid is not None:
        col = jax.lax.broadcasted_iota(jnp.int32, s.shape, 1)
        s = jnp.where(col < n_valid, s, -jnp.inf)
    m = jnp.max(s, axis=-1, keepdims=True)
    p = jnp.exp(s - m)
    l = jnp.sum(p, axis=-1, keepdims=True)
    inv_l = pl.reciprocal(l, approx=approx_recip)
    out_ref[...] = (p * inv_l).astype(out_ref.dtype)


def _softmax_twopass_kernel(tar_ref, refs_ref, out_ref, m_sc, l_sc, *,
                            n_valid, tn, exp_dtype):
    """Two-pass (stats, emit) softmax affinity for large ref extents.

    Grid: (ctx, tar_tiles, phase=2, ref_tiles).  Phase 0 accumulates the
    running row max / sum-of-exp over all ref tiles; phase 1 recomputes the
    scores and emits exp(s - logsumexp) tile by tile (no reciprocal, no
    rescaling of already-written output tiles).
    """
    ph = pl.program_id(2)
    ki = pl.program_id(3)
    nk = pl.num_programs(3)

    @pl.when((ph == 0) & (ki == 0))
    def _init():
        m_sc[...] = jnp.full(m_sc.shape, -jnp.inf, dtype=m_sc.dtype)
        l_sc[...] = jnp.zeros(l_sc.shape, dtype=l_sc.dtype)

    s = jnp.dot(tar_ref[...], refs_ref[...],
                preferred_element_type=jnp.float32)            # [tm, tn]
    if n_valid is not None:
        col = ki * tn + jax.lax.broadcasted_iota(jnp.int32, s.shape, 1)
        s = jnp.where(col < n_valid, s, -jnp.inf)

    @pl.when(ph == 0)
    def _stats():
        m_prev = m_sc[...]
        m_new = jnp.maximum(m_prev, jnp.max(s, axis=-1, keepdims=True))
        l_sc[...] = (l_sc[...] * jnp.exp(m_prev - m_new)
                     + jnp.sum(jnp.exp(s - m_new), axis=-1, keepdims=True))
        m_sc[...] = m_new

    @pl.when((ph == 0) & (ki == nk - 1))
    def _finalize():
        # (max, sum) -> logsumexp so the emit pass is a single exp/element.
        m_sc[...] = m_sc[...] + jnp.log(l_sc[...])

    @pl.when(ph == 1)
    def _emit():
        out_ref[...] = jnp.exp((s - m_sc[...]).astype(exp_dtype)
                               ).astype(out_ref.dtype)


def _raw_affinity_kernel(tar_ref, refs_ref, out_ref):
    """affinity_normalization is None: raw batched matmul."""
    out_ref[...] = jnp.dot(tar_ref[...], refs_ref[...],
                           preferred_element_type=jnp.float32
                           ).astype(out_ref.dtype)


# ---------------------------------------------------------------------------
# Helpers
# ---------------------------------------------------------------------------

def _l2_normalize(x, axis):
    """F.normalize(p=2): x / max(||x||_2, 1e-12); arithmetic in f32."""
    x32 = x.astype(jnp.float32)
    norm = jnp.sqrt(jnp.sum(x32 * x32, axis=axis, keepdims=True))
    return x32 / jnp.maximum(norm, 1e-12)


def _round_up(x, m):
    return ((x + m - 1) // m) * m


def _pick_tile(n, cap, align):
    """Largest divisor of n that is <= cap and a multiple of `align`.

    Callers pad n up to a multiple of `align`, so `align` itself is always a
    valid fallback (no more untiled full-extent blocks).
    """
    cap = max(align, min(cap, n))
    start = cap - (cap % align)
    for cand in range(start, 0, -align):
        if n % cand == 0:
            return cand
    return n


def _hw_params():
    """Generation-aware defaults (VMEM budget, tile caps, bf16 EUP, #TCs)."""
    kind = ""
    try:
        devs = jax.devices()
        if devs:
            kind = devs[0].device_kind.lower()
    except Exception:
        pass
    big_vmem = ("v5" in kind) or ("v6" in kind)     # 128 MiB VMEM generations
    vmem_phys = (128 << 20) if big_vmem else (64 << 20)   # conservative default
    try:  # only ever shrink the conservative estimate, never grow it
        info_vmem = int(pltpu.get_tpu_info().vmem_capacity_bytes)
        if 0 < info_vmem < vmem_phys:
            vmem_phys = info_vmem
    except Exception:
        pass
    return dict(
        kind=kind,
        vmem_phys=vmem_phys,
        is_multi_tc=("v7" in kind),                  # 2 TensorCores per chip
        has_bf16_eup=("v6" in kind) or ("v7" in kind),
        tm_cap=1024 if big_vmem else 512,
        tn_cap=2048,
    )


# ---------------------------------------------------------------------------
# Wrapper
# ---------------------------------------------------------------------------

def full_affinity(feat_tar, feat_refs, *,
                  feature_normalization=True,
                  apply_softmax=True,
                  out_dtype=jnp.bfloat16,
                  compute_dtype=None,
                  tile_tar=None,
                  tile_ref=None):
    """feat_tar: [N, F], feat_refs: [C, F, N] -> [C, N(tar), N(ref)].

    NOTE: out_dtype defaults to bfloat16 (the kernel is HBM-writeback bound);
    pass out_dtype=jnp.float32 for dtype parity with the PyTorch module.
    compute_dtype defaults to bfloat16 when feature_normalization is True
    (values bounded in [-1,1]); pass jnp.float32 for exact numerics.
    """
    n_tar, f = feat_tar.shape
    c, f2, n_ref = feat_refs.shape
    assert f == f2 and n_tar == n_ref

    hw = _hw_params()

    if compute_dtype is None:
        compute_dtype = (jnp.bfloat16 if feature_normalization
                         else jnp.result_type(feat_tar.dtype, feat_refs.dtype))
    compute_dtype = jnp.dtype(compute_dtype)
    out_dtype = jnp.dtype(out_dtype)
    in_b, out_b = compute_dtype.itemsize, out_dtype.itemsize

    # Normalize once in the wrapper (O(C*F*N), negligible vs the O(C*N^2)
    # output), then cast to the (usually bf16) compute dtype for the kernel.
    if feature_normalization:
        feat_tar = _l2_normalize(feat_tar, axis=1)
        feat_refs = _l2_normalize(feat_refs, axis=1)
    feat_tar = feat_tar.astype(compute_dtype)
    feat_refs = feat_refs.astype(compute_dtype)

    # ---- Padding for non-divisible N: lane-dense stores for any h*w --------
    align_tar = 16 if min(in_b, out_b) < 4 else 8   # bf16 sublane packing
    n_tar_pad = _round_up(n_tar, align_tar)
    n_ref_pad = _round_up(n_ref, 128)
    if n_tar_pad != n_tar:
        feat_tar = jnp.pad(feat_tar, ((0, n_tar_pad - n_tar), (0, 0)))
    if n_ref_pad != n_ref:
        feat_refs = jnp.pad(feat_refs, ((0, 0), (0, 0), (0, n_ref_pad - n_ref)))
    # Padded ref columns must be masked to -inf before softmax.
    n_valid = n_ref if (apply_softmax and n_ref_pad != n_ref) else None

    # ---- Generation-aware tile planning under the VMEM budget --------------
    tm_cap = tile_tar if tile_tar is not None else hw["tm_cap"]
    tn_cap = tile_ref if tile_ref is not None else hw["tn_cap"]
    vmem_limit = min(int(hw["vmem_phys"] * 0.78), 100 << 20)
    budget = int(vmem_limit * 0.85)

    def est(tm_, tn_):
        # double-buffered in/out tiles + f32 score/exp temporaries + row stats
        return (2 * tm_ * f * in_b + 2 * f * tn_ * in_b + 2 * tm_ * tn_ * out_b
                + 2 * tm_ * tn_ * 4 + 8 * tm_ * 4 + (1 << 20))

    tm = _pick_tile(n_tar_pad, tm_cap, align_tar)
    single_pass = False
    if apply_softmax and (tile_ref is None or n_ref_pad <= tn_cap):
        # Prefer the fused single-pass kernel: whole ref axis in one tile.
        tn_try, tm_try = n_ref_pad, tm
        tm_floor = max(align_tar, min(256, tm_cap))
        while est(tm_try, tn_try) > budget and tm_try > tm_floor:
            smaller = _pick_tile(n_tar_pad, max(tm_floor, tm_try // 2),
                                 align_tar)
            if smaller >= tm_try:
                break
            tm_try = smaller
        if est(tm_try, tn_try) <= budget:
            single_pass = True
            tm, tn = tm_try, tn_try
    if not single_pass:
        tn = _pick_tile(n_ref_pad, tn_cap, 128)
        for _ in range(24):
            if est(tm, tn) <= budget:
                break
            if tn > 128:
                smaller = _pick_tile(n_ref_pad, max(128, tn // 2), 128)
                if smaller < tn:
                    tn = smaller
                    continue
            if tm > align_tar:
                smaller = _pick_tile(n_tar_pad, max(align_tar, tm // 2),
                                     align_tar)
                if smaller < tm:
                    tm = smaller
                    continue
            break

    # Keep both TensorCores busy on multi-TC parts (v7x): need >= 2 parallel
    # grid points across (ctx, tar_tiles).
    if (hw["is_multi_tc"] and c * (n_tar_pad // tm) < 2
            and n_tar_pad >= 2 * align_tar):
        tm = _pick_tile(n_tar_pad, max(align_tar, n_tar_pad // 2), align_tar)

    nk = n_ref_pad // tn
    n_tiles_tar = n_tar_pad // tm

    approx_recip = out_b < 4                       # exact reciprocal for f32 out
    exp_dtype = (jnp.bfloat16 if (hw["has_bf16_eup"] and out_b < 4)
                 else jnp.float32)                 # bf16 EUP only on v6e/v7x

    # ---- Kernel / grid selection -------------------------------------------
    if not apply_softmax:
        kernel = _raw_affinity_kernel
        grid = (c, n_tiles_tar, nk)
        in_specs = [pl.BlockSpec((tm, f), lambda ci, ti, ki: (ti, 0)),
                    pl.BlockSpec((None, f, tn), lambda ci, ti, ki: (ci, 0, ki))]
        out_spec = pl.BlockSpec((None, tm, tn), lambda ci, ti, ki: (ci, ti, ki))
        scratch = []
        dims = ("parallel", "parallel", "parallel")
        passes, n_exp = 1, 0
    elif nk == 1:
        kernel = functools.partial(_softmax_onepass_kernel,
                                   n_valid=n_valid, approx_recip=approx_recip)
        grid = (c, n_tiles_tar)
        in_specs = [pl.BlockSpec((tm, f), lambda ci, ti: (ti, 0)),
                    pl.BlockSpec((None, f, tn), lambda ci, ti: (ci, 0, 0))]
        out_spec = pl.BlockSpec((None, tm, tn), lambda ci, ti: (ci, ti, 0))
        scratch = []
        dims = ("parallel", "parallel")
        passes, n_exp = 1, 1
    else:
        kernel = functools.partial(_softmax_twopass_kernel,
                                   n_valid=n_valid, tn=tn, exp_dtype=exp_dtype)
        grid = (c, n_tiles_tar, 2, nk)
        in_specs = [pl.BlockSpec((tm, f), lambda ci, ti, ph, ki: (ti, 0)),
                    pl.BlockSpec((None, f, tn),
                                 lambda ci, ti, ph, ki: (ci, 0, ki))]
        # NOTE: phase 0 parks the output index on ref-block 0 (never written),
        # and phase 1's first step (ki=0) writes that same resident block
        # before any eviction, so no garbage block is ever written back.
        # This relies on the last two grid axes (phase, ref-tile) iterating
        # innermost in this exact order with "arbitrary" semantics — do not
        # reorder them or mark them "parallel".
        out_spec = pl.BlockSpec((None, tm, tn),
                                lambda ci, ti, ph, ki: (ci, ti, ki * ph))
        scratch = [pltpu.VMEM((tm, 1), jnp.float32),   # running max -> lse
                   pltpu.VMEM((tm, 1), jnp.float32)]   # running sum of exp
        dims = ("parallel", "parallel", "arbitrary", "arbitrary")
        passes, n_exp = 2, 2

    # Advisory cost hint for XLA's scheduler (kernel is write-bound).
    refs_reads = (c * f * n_ref_pad * in_b if (apply_softmax and nk == 1)
                  else passes * c * n_tiles_tar * f * n_ref_pad * in_b)
    flops = 2 * c * n_tar_pad * n_ref_pad * f * passes
    transcendentals = n_exp * c * n_tar_pad * n_ref_pad
    bytes_accessed = (c * n_tar_pad * n_ref_pad * out_b + refs_reads
                      + c * n_tar_pad * f * in_b)

    out = pl.pallas_call(
        kernel,
        out_shape=jax.ShapeDtypeStruct((c, n_tar_pad, n_ref_pad), out_dtype),
        grid_spec=pltpu.PrefetchScalarGridSpec(
            num_scalar_prefetch=0,
            grid=grid,
            in_specs=in_specs,
            out_specs=out_spec,
            scratch_shapes=scratch,
        ),
        compiler_params=pltpu.CompilerParams(
            dimension_semantics=dims,
            vmem_limit_bytes=int(vmem_limit),
        ),
        cost_estimate=pl.CostEstimate(
            flops=int(flops),
            transcendentals=int(transcendentals),
            bytes_accessed=int(bytes_accessed),
        ),
    )(feat_tar, feat_refs)

    if n_tar_pad != n_tar or n_ref_pad != n_ref:
        out = out[:, :n_tar, :n_ref]
    return out


# ---------------------------------------------------------------------------
# Pure-JAX reference
# ---------------------------------------------------------------------------

def _reference(feat_tar, feat_refs, feature_normalization=True,
               apply_softmax=True):
    ft = feat_tar.astype(jnp.float32)
    fr = feat_refs.astype(jnp.float32)
    if feature_normalization:
        ft = ft / jnp.maximum(
            jnp.linalg.norm(ft, axis=1, keepdims=True), 1e-12)
        fr = fr / jnp.maximum(
            jnp.linalg.norm(fr, axis=1, keepdims=True), 1e-12)
    aff = jnp.einsum("tf,cfr->ctr", ft, fr)
    if apply_softmax:
        aff = jax.nn.softmax(aff, axis=-1)
    return aff


if __name__ == "__main__":
    key = jax.random.PRNGKey(0)
    k1, k2, k3, k4 = jax.random.split(key, 4)

    # Shapes consistent with the forward: h=w=16 -> N=256 pixels, 32 feats,
    # 2 context frames.
    h = w = 16
    num_feats = 32
    num_ctx = 2
    n = h * w

    feat_tar = jax.random.normal(k1, (n, num_feats), dtype=jnp.float32)
    feat_refs = jax.random.normal(k2, (num_ctx, num_feats, n),
                                  dtype=jnp.float32)
    ref = _reference(feat_tar, feat_refs, True, True)

    # 1) Default path: bf16 compute + bf16 output, fused single-pass softmax.
    out_bf16 = jax.block_until_ready(full_affinity(feat_tar, feat_refs))
    assert out_bf16.shape == (num_ctx, n, n)
    assert out_bf16.dtype == jnp.bfloat16
    assert jnp.allclose(out_bf16.astype(jnp.float32), ref,
                        atol=5e-3, rtol=5e-2)

    # 2) f32 compute/output, small tiles -> exercises the two-pass online
    #    softmax path (grid: 2 tar tiles x 2 phases x 2 ref tiles).
    out_f32 = jax.block_until_ready(full_affinity(
        feat_tar, feat_refs, out_dtype=jnp.float32,
        compute_dtype=jnp.float32, tile_tar=128, tile_ref=128))
    assert jnp.allclose(out_f32, ref, atol=1e-5, rtol=1e-4)

    # 3) affinity_normalization is None: raw batched matmul path.
    raw_ref = _reference(feat_tar, feat_refs, True, False)
    out_raw = jax.block_until_ready(full_affinity(
        feat_tar, feat_refs, apply_softmax=False,
        out_dtype=jnp.float32, compute_dtype=jnp.float32))
    assert jnp.allclose(out_raw, raw_ref, atol=1e-5, rtol=1e-5)

    # 4) Non-divisible h*w (h=w=10 -> N=100): padded ref axis + -inf masking,
    #    fused single-pass kernel on the ragged shape.
    n_small = 10 * 10
    ft_s = jax.random.normal(k3, (n_small, num_feats), dtype=jnp.float32)
    fr_s = jax.random.normal(k4, (1, num_feats, n_small), dtype=jnp.float32)
    ref_s = _reference(ft_s, fr_s, True, True)
    out_s = jax.block_until_ready(full_affinity(
        ft_s, fr_s, out_dtype=jnp.float32, compute_dtype=jnp.float32))
    assert out_s.shape == (1, n_small, n_small)
    assert jnp.allclose(out_s, ref_s, atol=1e-5, rtol=1e-4)

    # 5) Non-divisible h*w forced onto the two-pass path (padding lands in the
    #    last ref tile -> exercises the masked online-stats code).
    n_mid = 200
    ft_m = jax.random.normal(k3, (n_mid, num_feats), dtype=jnp.float32)
    fr_m = jax.random.normal(k4, (1, num_feats, n_mid), dtype=jnp.float32)
    ref_m = _reference(ft_m, fr_m, True, True)
    out_m = jax.block_until_ready(full_affinity(
        ft_m, fr_m, out_dtype=jnp.float32, compute_dtype=jnp.float32,
        tile_tar=64, tile_ref=128))
    assert out_m.shape == (1, n_mid, n_mid)
    assert jnp.allclose(out_m, ref_m, atol=1e-5, rtol=1e-4)

    print("KERNEL_OK")
</pallas_src>

<mosaic_0001>
module attributes {stable_mosaic.version = 11 : i64} {
  func.func @_softmax_onepass_kernel(%arg0: i32, %arg1: i32, %arg2: memref<256x32xbf16, #tpu.memory_space<vmem>>, %arg3: memref<1x32x256xbf16, #tpu.memory_space<vmem>>, %arg4: memref<1x256x256xbf16, #tpu.memory_space<vmem>>) attributes {dimension_semantics = [#tpu.dimension_semantics<parallel>, #tpu.dimension_semantics<parallel>], iteration_bounds = array<i64: 2, 1>, scalar_prefetch = 0 : i64, scratch_operands = 0 : i64, tpu.core_type = #tpu.core_type<tc>, window_params = [{transform_indices = @transform_0, window_bounds = array<i64: 256, 32>}, {transform_indices = @transform_1, window_bounds = array<i64: 1, 32, 256>}, {transform_indices = @transform_2, window_bounds = array<i64: 1, 256, 256>}]} {
    %c0 = arith.constant 0 : index
    %c0_0 = arith.constant 0 : index
    %0 = vector.load %arg2[%c0, %c0_0] : memref<256x32xbf16, #tpu.memory_space<vmem>>, vector<256x32xbf16>
    %c0_1 = arith.constant 0 : index
    %c0_2 = arith.constant 0 : index
    %c0_3 = arith.constant 0 : index
    %1 = vector.load %arg3[%c0_1, %c0_2, %c0_3] : memref<1x32x256xbf16, #tpu.memory_space<vmem>>, vector<1x32x256xbf16>
    %2 = vector.shape_cast %1 : vector<1x32x256xbf16> to vector<32x256xbf16>
    %cst = arith.constant dense<0.000000e+00> : vector<256x256xf32>
    %3 = tpu.matmul %0, %2, %cst {dimension_numbers = #tpu.dot_dimension_numbers<[1], [0], [0], [1], [0, 0, 1, 1], [], []>} : vector<256x32xbf16>, vector<32x256xbf16>, vector<256x256xf32> -> vector<256x256xf32>
    %cst_4 = arith.constant dense<0xFF800000> : vector<256xf32>
    %4 = vector.multi_reduction <maximumf>, %3, %cst_4 [1] : vector<256x256xf32> to vector<256xf32>
    %5 = vector.shape_cast %4 : vector<256xf32> to vector<256x1xf32>
    %6 = vector.broadcast %5 : vector<256x1xf32> to vector<256x256xf32>
    %7 = arith.subf %3, %6 : vector<256x256xf32>
    %8 = math.exp %7 : vector<256x256xf32>
    %cst_5 = arith.constant dense<0.000000e+00> : vector<256xf32>
    %9 = vector.multi_reduction <add>, %8, %cst_5 [1] : vector<256x256xf32> to vector<256xf32>
    %10 = vector.shape_cast %9 : vector<256xf32> to vector<256x1xf32>
    %11 = tpu.reciprocal %10 {approx = true} : vector<256x1xf32> -> vector<256x1xf32>
    %12 = vector.broadcast %11 : vector<256x1xf32> to vector<256x256xf32>
    %13 = arith.mulf %8, %12 : vector<256x256xf32>
    %14 = arith.truncf %13 : vector<256x256xf32> to vector<256x256xbf16>
    %c0_6 = arith.constant 0 : index
    %c0_7 = arith.constant 0 : index
    %c0_8 = arith.constant 0 : index
    %15 = vector.load %arg4[%c0_6, %c0_7, %c0_8] : memref<1x256x256xbf16, #tpu.memory_space<vmem>>, vector<1x256x256xbf16>
    %16 = vector.shape_cast %15 : vector<1x256x256xbf16> to vector<256x256xbf16>
    %17 = vector.shape_cast %14 : vector<256x256xbf16> to vector<1x256x256xbf16>
    tpu.vector_store %arg4[%c0_6, %c0_7, %c0_8], %17 {strides = array<i32>} : memref<1x256x256xbf16, #tpu.memory_space<vmem>>, vector<1x256x256xbf16>,
    return
  }
  func.func @transform_0(%arg0: i32, %arg1: i32) -> (i32, i32) {
    %c0_i32 = arith.constant 0 : i32
    %c0_i32_0 = arith.constant 0 : i32
    return %arg1, %c0_i32 : i32, i32
  }
  func.func @transform_1(%arg0: i32, %arg1: i32) -> (i32, i32, i32) {
    %c0_i32 = arith.constant 0 : i32
    %c0_i32_0 = arith.constant 0 : i32
    %c0_i32_1 = arith.constant 0 : i32
    return %arg0, %c0_i32, %c0_i32_0 : i32, i32, i32
  }
  func.func @transform_2(%arg0: i32, %arg1: i32) -> (i32, i32, i32) {
    %c0_i32 = arith.constant 0 : i32
    %c0_i32_0 = arith.constant 0 : i32
    return %arg0, %arg1, %c0_i32 : i32, i32, i32
  }
}

</mosaic_0001>

<bundles_post_ra>
// kernel: tpu_custom_call.1
= control target key start
LH: loop header
LB: loop body
LE: loop exit
PB: predicated region body
PF: predicated region fallthrough
CT: control target
= control target key end

     0   :  { %7 = vsyncpa [#allocation3], 0  ;;  %s2585_s0 = inlined_call_operand.vmem [shape: bf16[256,32], index: 0, kind: input, shape index: {}]   ;;  %s2586_s1 = inlined_call_operand.vmem [shape: bf16[2,32,256], index: 1, kind: input, shape index: {}]   ;;  %s2587_s2 = inlined_call_operand.hbm [shape: bf16[2,256,256], index: 2, kind: output, shape index: {}]  }
   0x1   :  { %9 = vsyncpa [#allocation3 + $0x1], 0  ;;  %s1856_s9 = smov 0   ;;  %s1858_s10 = smov 0  }
   0x2   :  { %s1860_s11 = smov 0   ;;  %s1862_s12 = smov 0  }
   0x3   :  { %s1864_s13 = smov 0   ;;  %s1866_s14 = smov 0  }
   0x4 LB: > { %s1367_s15 = sadd.s32 4294967295, %s1835_s14   ;;  %s1368_s16 = sadd.s32 4294967294, %s1835_s14   ;;  %s1835_s14 = sphi %s1866_s14, %s15_s14   ;;  %s1831_s13 = sphi %s1864_s13, %s2672_s13   ;;  %s1827_s12 = sphi %s1862_s12, %s2671_s12   ;;  %s1823_s11 = sphi %s1860_s11, %s2670_s11   ;;  %s1819_s10 = sphi %s1858_s10, %s2669_s10   ;;  %s1815_s9 = sphi %s1856_s9, %s2668_s9  }
   0x5   : > { %s27_s17 = sadd.s32 1, %s1831_s13  ;;  %s88_s18 = sadd.s32 1, %s1823_s11 }
   0x6   : > { %p29_p0 = scmp.ge.s32.totalorder %s27_s17, 2  ;;  %p98_p1 = scmp.ne.s32.totalorder %s1823_s11, %s1819_s10 }
   0x7   : > { %p99_p2 = scmp.eq.s32.totalorder %s1367_s15, 1  ;;  %p104_p3 = scmp.ne.s32.totalorder %s1819_s10, %s1815_s9 }
   0x8   : > { %s2674_s17 = smov (%p29_p0, %s27_s17), 0  ;;  %p105_p5 = scmp.eq.s32.totalorder %s1368_s16, 1 }
   0x9   : > { %p1896_p4 = por %p99_p2, %p98_p1  ;;  %s83_s20 = ssub.s32 %s1831_s13, %s2674_s17 }
   0xa   : > { %p1372_p6 = scmp.ge.s32.totalorder %s1835_s14, 1  ;;  %p86_p7 = scmp.eq.s32.totalorder %s83_s20, 0 }
   0xb   : > { %p1903_p8 = por %p105_p5, %p104_p3  ;;  %p140_p9 = scmp.lt.s32.totalorder %s1835_s14, 3 }
   0xc   : > { %s1909_s22 = scalar_select %p86_p7, %s1823_s11, %s88_s18  }
   0xd   : > { %p141_p10 = pnand %p1372_p6, %p140_p9 }
   0xf   : > { %144 = sbr.rel (%p141_p10) target bundleno = 629 (0x275), region = 28 }
  0x14   : > { %p173_p11 = scmp.lt.s32.totalorder %s1827_s12, 1  ;;  %v1837_v0 = vmov 0   ;;  %v1551_v5 = vld [vmem:[%s2585_s0] sm:$0xff]   ;;  %vm316_vm0 = vcmask 261120   ;;  %v1553_v7 = vld [vmem:[%s2585_s0 + $0x8] sm:$0xff]   ;;  %v1555_v9 = vld [vmem:[%s2585_s0 + $0x10] sm:$0xff]  }
  0x15   : > { %397 = vmatprep.mubr.bf16.mxu0 %v1837_v0  ;;  %477 = vmatprep.mubr.bf16.mxu1 %v1837_v0  ;;  %v1552_v6 = vld [vmem:[%s2585_s0 + $0x40] sm:$0xff]   ;;  %v1554_v8 = vld [vmem:[%s2585_s0 + $0x48] sm:$0xff]   ;;  %v1556_v10 = vld [vmem:[%s2585_s0 + $0x50] sm:$0xff]   ;;  %s1838_s5 = smov [#allocation2]  }
  0x16   : > { %s174_s23 = scalar_select %p173_p11, %s1827_s12, 1  ;;  %v1557_v11 = vld [vmem:[%s2585_s0 + $0x18] sm:$0xff]   ;;  %v1559_v13 = vld [vmem:[%s2585_s0 + $0x20] sm:$0xff]   ;;  %v1561_v15 = vld [vmem:[%s2585_s0 + $0x28] sm:$0xff]  }
  0x17   : > { %v1558_v12 = vld [vmem:[%s2585_s0 + $0x58] sm:$0xff]   ;;  %v1560_v14 = vld [vmem:[%s2585_s0 + $0x60] sm:$0xff]   ;;  %v1562_v16 = vld [vmem:[%s2585_s0 + $0x68] sm:$0xff]   ;;  %s1763_s6 = sshll.u32 %s1838_s5, 4  ;;  %s1764_s6 = int_to_ptr.vmem [resolvable:$false] %s1763_s6 }
  0x18   : > { %s1449_s24 = sshll.u32 %s174_s23, 5  ;;  %v1563_v17 = vld [vmem:[%s2585_s0 + $0x30] sm:$0xff]   ;;  %v1565_v19 = vld [vmem:[%s2585_s0 + $0x38] sm:$0xff]   ;;  %s1765_s7 = scalar_lea.vmem %s1764_s6, 8192 }
  0x19   : > { %s177_s27 = scalar_lea.vmem %s2586_s1, %s1449_s24  ;;  %v1564_v18 = vld [vmem:[%s2585_s0 + $0x70] sm:$0xff]   ;;  %v1566_v20 = vld [vmem:[%s2585_s0 + $0x78] sm:$0xff]   ;;  %s164_s24 = sand.u32 1, %s1819_s10  }
  0x1a   : > { %v1545_v1 = vld [vmem:[%s177_s27 + $0x14] ss:$8 sps:$4 sm:$0xff]   ;;  %v1547_v2 = vld [vmem:[%s177_s27 + $0x10] ss:$8 sps:$4 sm:$0xff]   ;;  %v1548_v3 = vld [vmem:[%s177_s27 + $0x4] ss:$8 sps:$4 sm:$0xff]  }
  0x1b   : > { %377 = vmatprep.subr.bf16.mxu0 %v1545_v1  ;;  %1483 = vmatprep.subr.bf16.mxu1 %v1545_v1  ;;  %v1550_v4 = vld [vmem:[%s177_s27] ss:$8 sps:$4 sm:$0xff]   ;;  %s1373_s25 = sshll.u32 %s164_s24, 8  ;;  %s1482_s27 = sshll.u32 %s1827_s12, 12 }
  0x1c   : > { %378 = vmatpush1.bf16.msra.mxu0 %v1547_v2  ;;  %1485 = vmatpush1.bf16.msra.mxu1 %v1547_v2  ;;  %s2433_s26 = scalar_lea.vmem [#allocation2], %s1373_s25  ;;  %s2533_s3 = scalar_lea.hbm %s2587_s2, %s1482_s27 }
  0x1d   : > { %379 = vmatprep.subr.bf16.mxu0 %v1548_v3  ;;  %1484 = vmatprep.subr.bf16.mxu1 %v1548_v3  ;;  %s1279_s28 = sshll.u32 %s2433_s26, 4  ;;  %s2540_s12 = scalar_lea.sflag [#allocation3], %s164_s24  ;;  %s2535_s28 = int_to_ptr.vmem [resolvable:$true] %s1279_s28 }
  0x1e   : > { %s1759_s4 = scalar_lea.vmem %s2535_s28, 4096  ;;  %p1766_p1 = scmp.lt.s32.totalorder %s2535_s28, %s1764_s6 }
  0x1f   : > { %p1760_p12 = scmp.ne.s32.totalorder %s2535_s28, %s1759_s4  ;;  %p1767_p2 = scmp.lt.s32.totalorder %s1765_s7, %s1759_s4 }
  0x20   : > { %380 = vmatpush1.bf16.msra.mxu0 %v1550_v4  ;;  %1486 = vmatpush1.bf16.msra.mxu1 %v1550_v4 }
  0x21   : > { %p1761_p13 = pnand %p1760_p12, %p1896_p4  ;;  %p1768_p3 = por %p1767_p2, %p1766_p1 }
  0x23   : > { %1396 = vmatmul.mubr.msk.bf16.vlgmr.msra.gmra.mxu0 %vm316_vm0, %v1551_v5  ;;  %1404 = vmatmul.mubr.msk.bf16.vlgmr.msra.gmra.mxu1 %vm316_vm0, %v1552_v6  ;;  %p1762_p0 = pneg %p1761_p13 }
  0x24   : > { %407 = vmatprep.mubr.bf16.mxu0 %v1837_v0  ;;  %487 = vmatprep.mubr.bf16.mxu1 %v1837_v0 }
  0x25   : > { %p1769_p5 = pnand %p1768_p3, %p1762_p0 }
  0x2b   : > { %1397 = vmatmul.mubr.msk.bf16.gmra.mxu0 %vm316_vm0, %v1553_v7  ;;  %1405 = vmatmul.mubr.msk.bf16.gmra.mxu1 %vm316_vm0, %v1554_v8 }
  0x2c   : > { %417 = vmatprep.mubr.bf16.mxu0 %v1837_v0  ;;  %497 = vmatprep.mubr.bf16.mxu1 %v1837_v0 }
  0x33   : > { %1398 = vmatmul.mubr.msk.bf16.gmra.mxu0 %vm316_vm0, %v1555_v9  ;;  %1406 = vmatmul.mubr.msk.bf16.gmra.mxu1 %vm316_vm0, %v1556_v10 }
  0x34   : > { %427 = vmatprep.mubr.bf16.mxu0 %v1837_v0  ;;  %507 = vmatprep.mubr.bf16.mxu1 %v1837_v0 }
  0x3b   : > { %1399 = vmatmul.mubr.msk.bf16.gmra.mxu0 %vm316_vm0, %v1557_v11  ;;  %1407 = vmatmul.mubr.msk.bf16.gmra.mxu1 %vm316_vm0, %v1558_v12 }
  0x3c   : > { %437 = vmatprep.mubr.bf16.mxu0 %v1837_v0  ;;  %517 = vmatprep.mubr.bf16.mxu1 %v1837_v0 }
  0x43   : > { %1400 = vmatmul.mubr.msk.bf16.gmra.mxu0 %vm316_vm0, %v1559_v13  ;;  %1408 = vmatmul.mubr.msk.bf16.gmra.mxu1 %vm316_vm0, %v1560_v14 }
  0x44   : > { %447 = vmatprep.mubr.bf16.mxu0 %v1837_v0  ;;  %527 = vmatprep.mubr.bf16.mxu1 %v1837_v0 }
  0x4b   : > { %1401 = vmatmul.mubr.msk.bf16.gmra.mxu0 %vm316_vm0, %v1561_v15  ;;  %1409 = vmatmul.mubr.msk.bf16.gmra.mxu1 %vm316_vm0, %v1562_v16 }
  0x4c   : > { %457 = vmatprep.mubr.bf16.mxu0 %v1837_v0  ;;  %537 = vmatprep.mubr.bf16.mxu1 %v1837_v0 }
  0x53   : > { %1402 = vmatmul.mubr.msk.bf16.gmra.mxu0 %vm316_vm0, %v1563_v17  ;;  %1410 = vmatmul.mubr.msk.bf16.gmra.mxu1 %vm316_vm0, %v1564_v18 }
  0x54   : > { %467 = vmatprep.mubr.bf16.mxu0 %v1837_v0  ;;  %547 = vmatprep.mubr.bf16.mxu1 %v1837_v0 }
  0x5b   : > { %1403 = vmatmul.mubr.msk.bf16.gmra.mxu0 %vm316_vm0, %v1565_v19  ;;  %1411 = vmatmul.mubr.msk.bf16.gmra.mxu1 %vm316_vm0, %v1566_v20 }
  0xe3   : > { %v1980_v21 = vpop.f32.mrf.mxu0  ;;  %v1982_v22 = vpop.f32.mrf.mxu1 }
  0xe5   : > { %v1984_v23 = vpop.f32.mrf.mxu0  ;;  %v1986_v24 = vpop.f32.mrf.mxu1 }
  0xe6   : > { %v558_v25 = vmax.f32 %v1980_v21, %v1984_v23  ;;  %v606_v31 = vmax.f32 %v1982_v22, %v1986_v24 }
  0xe7   : > { %v1990_v26 = vpop.f32.mrf.mxu0  ;;  %v1992_v27 = vpop.f32.mrf.mxu1 }
  0xe8   : > { %559 = vmax.xlane.f32.xlu0 %v558_v25 }
  0xe9   : > { %v1994_v28 = vpop.f32.mrf.mxu0  ;;  %v1996_v29 = vpop.f32.mrf.mxu1 }
  0xea   : > { %v609_v30 = vmax.f32 %v1992_v27, %v1996_v29  ;;  %v561_v36 = vmax.f32 %v1990_v26, %v1994_v28 }
  0xeb   : > { %v2002_v32 = vpop.f32.mrf.mxu0  ;;  %v2004_v33 = vpop.f32.mrf.mxu1 }
  0xec   : > { %610 = vmax.xlane.f32.xlu1 %v609_v30  ;;  %607 = vmax.xlane.f32.xlu0 %v606_v31 }
  0xed   : > { %v2006_v34 = vpop.f32.mrf.mxu0  ;;  %v2008_v35 = vpop.f32.mrf.mxu1 }
  0xee   : > { %v564_v37 = vmax.f32 %v2002_v32, %v2006_v34  ;;  %v612_v40 = vmax.f32 %v2004_v33, %v2008_v35 }
  0xef   : > { %v2014_v38 = vpop.f32.mrf.mxu0  ;;  %v2016_v39 = vpop.f32.mrf.mxu1 }
  0xf0   : > { %562 = vmax.xlane.f32.xlu0 %v561_v36  ;;  %565 = vmax.xlane.f32.xlu1 %v564_v37 }
  0xf1   : > { %v2020_v41 = vpop.f32.mrf.mxu0  ;;  %v2022_v42 = vpop.f32.mrf.mxu1 }
  0xf2   : > { %v567_v43 = vmax.f32 %v2014_v38, %v2020_v41  ;;  %v615_v48 = vmax.f32 %v2016_v39, %v2022_v42 }
  0xf3   : > { %v2026_v44 = vpop.f32.mrf.mxu0  ;;  %v2028_v45 = vpop.f32.mrf.mxu1 }
  0xf4   : > { %613 = vmax.xlane.f32.xlu0 %v612_v40  ;;  %568 = vmax.xlane.f32.xlu1 %v567_v43 }
  0xf5   : > { %v2030_v46 = vpop.f32.mrf.mxu0  ;;  %v2032_v47 = vpop.f32.mrf.mxu1 }
  0xf6   : > { %v570_v49 = vmax.f32 %v2026_v44, %v2030_v46  ;;  %v618_v52 = vmax.f32 %v2028_v45, %v2032_v47 }
  0xf7   : > { %v2038_v50 = vpop.f32.mrf.mxu0  ;;  %v2040_v51 = vpop.f32.mrf.mxu1 }
  0xf8   : > { %616 = vmax.xlane.f32.xlu1 %v615_v48  ;;  %571 = vmax.xlane.f32.xlu0 %v570_v49 }
  0xf9   : > { %v2044_v53 = vpop.f32.mrf.mxu0  ;;  %v2046_v54 = vpop.f32.mrf.mxu1 }
  0xfa   : > { %v573_v55 = vmax.f32 %v2038_v50, %v2044_v53  ;;  %v621_v60 = vmax.f32 %v2040_v51, %v2046_v54 }
  0xfb   : > { %v2050_v56 = vpop.f32.mrf.mxu0  ;;  %v2052_v57 = vpop.f32.mrf.mxu1 }
  0xfc   : > { %619 = vmax.xlane.f32.xlu0 %v618_v52  ;;  %574 = vmax.xlane.f32.xlu1 %v573_v55 }
  0xfd   : > { %v2054_v58 = vpop.f32.mrf.mxu0  ;;  %v2056_v59 = vpop.f32.mrf.mxu1 }
  0xfe   : > { %v576_v61 = vmax.f32 %v2050_v56, %v2054_v58  ;;  %v624_v0 = vmax.f32 %v2052_v57, %v2056_v59 }
  0xff   : > { %v2062_v62 = vpop.f32.mrf.mxu0  ;;  %v2064_v63 = vpop.f32.mrf.mxu1 }
 0x100   : > { %622 = vmax.xlane.f32.xlu1 %v621_v60  ;;  %577 = vmax.xlane.f32.xlu0 %v576_v61 }
 0x101   : > { %v2068_v1 = vpop.f32.mrf.mxu0  ;;  %v2070_v2 = vpop.f32.mrf.mxu1 }
 0x102   : > { %v579_v3 = vmax.f32 %v2062_v62, %v2068_v1  ;;  %v627_v8 = vmax.f32 %v2064_v63, %v2070_v2 }
 0x103   : > { %v2074_v4 = vpop.f32.mrf.mxu0  ;;  %v2076_v5 = vpop.f32.mrf.mxu1 }
 0x104   : > { %625 = vmax.xlane.f32.xlu0 %v624_v0  ;;  %580 = vmax.xlane.f32.xlu1 %v579_v3 }
 0x105   : > { %v2078_v6 = vpop.f32.mrf.mxu0  ;;  %v2080_v7 = vpop.f32.mrf.mxu1 }
 0x106   : > { %v582_v9 = vmax.f32 %v2074_v4, %v2078_v6  ;;  %v630_v12 = vmax.f32 %v2076_v5, %v2080_v7 }
 0x107   : > { %v2086_v10 = vpop.f32.mrf.mxu0  ;;  %v2088_v11 = vpop.f32.mrf.mxu1 }
 0x108   : > { %628 = vmax.xlane.f32.xlu1 %v627_v8  ;;  %583 = vmax.xlane.f32.xlu0 %v582_v9 }
 0x109   : > { %v2092_v13 = vpop.f32.mrf.mxu0  ;;  %v2094_v14 = vpop.f32.mrf.mxu1 }
 0x10a   : > { %v585_v15 = vmax.f32 %v2086_v10, %v2092_v13  ;;  %v633_v20 = vmax.f32 %v2088_v11, %v2094_v14 }
 0x10b   : > { %v2098_v16 = vpop.f32.mrf.mxu0  ;;  %v2100_v17 = vpop.f32.mrf.mxu1 }
 0x10c   : > { %631 = vmax.xlane.f32.xlu0 %v630_v12  ;;  %586 = vmax.xlane.f32.xlu1 %v585_v15 }
 0x10d   : > { %v2102_v18 = vpop.f32.mrf.mxu0  ;;  %v2104_v19 = vpop.f32.mrf.mxu1 }
 0x10e   : > { %v588_v25 = vmax.f32 %v2098_v16, %v2102_v18  ;;  %v636_v36 = vmax.f32 %v2100_v17, %v2104_v19 }
 0x10f   : > { %v2110_v30 = vpop.f32.mrf.mxu0  ;;  %v2112_v31 = vpop.f32.mrf.mxu1 }
 0x110   : > { %634 = vmax.xlane.f32.xlu1 %v633_v20  ;;  %589 = vmax.xlane.f32.xlu0 %v588_v25 }
 0x111   : > { %v2116_v37 = vpop.f32.mrf.mxu0  ;;  %v2118_v40 = vpop.f32.mrf.mxu1 }
 0x112   : > { %v591_v43 = vmax.f32 %v2110_v30, %v2116_v37  ;;  %v639_v60 = vmax.f32 %v2112_v31, %v2118_v40 }
 0x113   : > { %v2122_v48 = vpop.f32.mrf.mxu0  ;;  %v2124_v49 = vpop.f32.mrf.mxu1 }
 0x114   : > { %2616 = vst [vmem:[#allocation5_spill] sm:$0xff] %v2124_v49  ;;  %637 = vmax.xlane.f32.xlu0 %v636_v36  ;;  %592 = vmax.xlane.f32.xlu1 %v591_v43 }
 0x115   : > { %v2126_v52 = vpop.f32.mrf.mxu0  ;;  %v2128_v55 = vpop.f32.mrf.mxu1 }
 0x116   : > { %2617 = vst [vmem:[#allocation6_spill] sm:$0xff] %v2126_v52  ;;  %2618 = vst [vmem:[#allocation7_spill] sm:$0xff] %v2128_v55  ;;  %v594_v61 = vmax.f32 %v2122_v48, %v2126_v52  ;;  %v642_v8 = vmax.f32 %v2124_v49, %v2128_v55 }
 0x117   : > { %v2134_v0 = vpop.f32.mrf.mxu0  ;;  %v2136_v3 = vpop.f32.mrf.mxu1 }
 0x118   : > { %2619 = vst [vmem:[#allocation8_spill] sm:$0xff] %v2134_v0  ;;  %2620 = vst [vmem:[#allocation9_spill] sm:$0xff] %v2136_v3  ;;  %640 = vmax.xlane.f32.xlu1 %v639_v60  ;;  %595 = vmax.xlane.f32.xlu0 %v594_v61 }
 0x119   : > { %v2140_v9 = vpop.f32.mrf.mxu0  ;;  %v2142_v12 = vpop.f32.mrf.mxu1 }
 0x11a   : > { %2621 = vst [vmem:[#allocation10_spill] sm:$0xff] %v2140_v9  ;;  %2622 = vst [vmem:[#allocation11_spill] sm:$0xff] %v2142_v12  ;;  %v597_v15 = vmax.f32 %v2134_v0, %v2140_v9  ;;  %v645_v60 = vmax.f32 %v2136_v3, %v2142_v12 }
 0x11b   : > { %v2146_v20 = vpop.f32.mrf.mxu0  ;;  %v2148_v25 = vpop.f32.mrf.mxu1 }
 0x11c   : > { %2623 = vst [vmem:[#allocation12_spill] sm:$0xff] %v2146_v20  ;;  %2624 = vst [vmem:[#allocation13_spill] sm:$0xff] %v2148_v25  ;;  %643 = vmax.xlane.f32.xlu0 %v642_v8  ;;  %598 = vmax.xlane.f32.xlu1 %v597_v15 }
 0x11d   : > { %v2150_v36 = vpop.f32.mrf.mxu0  ;;  %v2152_v43 = vpop.f32.mrf.mxu1 }
 0x11e   : > { %2625 = vst [vmem:[#allocation14_spill] sm:$0xff] %v2150_v36  ;;  %2626 = vst [vmem:[#allocation15_spill] sm:$0xff] %v2152_v43  ;;  %v600_v61 = vmax.f32 %v2146_v20, %v2150_v36  ;;  %v648_v8 = vmax.f32 %v2148_v25, %v2152_v43 }
 0x11f   : > { %v2158_v55 = vpop.f32.mrf.mxu0  ;;  %v2160_v49 = vpop.f32.mrf.mxu1 }
 0x120   : > { %2627 = vst [vmem:[#allocation16_spill] sm:$0xff] %v2158_v55  ;;  %2628 = vst [vmem:[#allocation17_spill] sm:$0xff] %v2160_v49  ;;  %646 = vmax.xlane.f32.xlu1 %v645_v60  ;;  %601 = vmax.xlane.f32.xlu0 %v600_v61 }
 0x121   : > { %v2164_v15 = vpop.f32.mrf.mxu0  ;;  %v2168_v0 = vpop.f32.mrf.mxu1 }
 0x122   : > { %2629 = vst [vmem:[#allocation18_spill] sm:$0xff] %v2164_v15  ;;  %v603_v9 = vmax.f32 %v2158_v55, %v2164_v15  ;;  %2630 = vst [vmem:[#allocation19_spill] sm:$0xff] %v2168_v0  ;;  %v651_v36 = vmax.f32 %v2160_v49, %v2168_v0 }
 0x124   : > { %649 = vmax.xlane.f32.xlu0 %v648_v8  ;;  %604 = vmax.xlane.f32.xlu1 %v603_v9 }
 0x128   : > { %652 = vmax.xlane.f32.xlu1 %v651_v36 }
 0x171   : > { %v560_v20 = vpop.xlane.xlu0 %559 }
 0x172   : > { %v654_v60 = vsub.f32 %v1980_v21, %v560_v20  ;;  %v655_v61 = vsub.f32 %v1984_v23, %v560_v20 }
 0x174   : > { %v718_v12 = vmul.f32 1.442695, %v654_v60  ;;  %v720_v43 = vmul.f32 1.442695, %v655_v61 }
 0x175   : > { %v611_v25 = vpop.xlane.xlu1 %610  ;;  %v608_v3 = vpop.xlane.xlu0 %607 }
 0x176   : > { %1567 = vpow2.f32 %v718_v12  ;;  %v688_v15 = vsub.f32 %v1992_v27, %v611_v25  ;;  %v689_v55 = vsub.f32 %v1996_v29, %v611_v25  ;;  %v686_v9 = vsub.f32 %v1982_v22, %v608_v3 }
 0x177   : > { %1569 = vpow2.f32 %v720_v43  ;;  %v687_v8 = vsub.f32 %v1986_v24, %v608_v3 }
 0x178   : > { %v786_v36 = vmul.f32 1.442695, %v688_v15  ;;  %v788_v0 = vmul.f32 1.442695, %v689_v55  ;;  %v782_v49 = vmul.f32 1.442695, %v686_v9 }
 0x179   : > { %v784_v21 = vmul.f32 1.442695, %v687_v8  ;;  %v563_v52 = vpop.xlane.xlu0 %562  ;;  %v566_v23 = vpop.xlane.xlu1 %565 }
 0x17a   : > { %1571 = vpow2.f32 %v786_v36  ;;  %v656_v20 = vsub.f32 %v1990_v26, %v563_v52  ;;  %v657_v12 = vsub.f32 %v1994_v28, %v563_v52  ;;  %v658_v27 = vsub.f32 %v2002_v32, %v566_v23 }
 0x17b   : > { %1573 = vpow2.f32 %v788_v0  ;;  %v659_v29 = vsub.f32 %v2006_v34, %v566_v23 }
 0x17c   : > { %1575 = vpow2.f32 %v782_v49  ;;  %v722_v22 = vmul.f32 1.442695, %v656_v20  ;;  %v724_v25 = vmul.f32 1.442695, %v657_v12  ;;  %v726_v24 = vmul.f32 1.442695, %v658_v27 }
 0x17d   : > { %1577 = vpow2.f32 %v784_v21  ;;  %v728_v55 = vmul.f32 1.442695, %v659_v29  ;;  %v614_v3 = vpop.xlane.xlu0 %613  ;;  %v569_v43 = vpop.xlane.xlu1 %568 }
 0x17e   : > { %1579 = vpow2.f32 %v722_v22  ;;  %v690_v15 = vsub.f32 %v2004_v33, %v614_v3  ;;  %v691_v26 = vsub.f32 %v2008_v35, %v614_v3  ;;  %v660_v28 = vsub.f32 %v2014_v38, %v569_v43 }
 0x17f   : > { %1581 = vpow2.f32 %v724_v25  ;;  %v661_v32 = vsub.f32 %v2020_v41, %v569_v43 }
 0x180   : > { %1583 = vpow2.f32 %v726_v24  ;;  %v790_v34 = vmul.f32 1.442695, %v690_v15  ;;  %v792_v49 = vmul.f32 1.442695, %v691_v26  ;;  %v730_v52 = vmul.f32 1.442695, %v660_v28 }
 0x181   : > { %1585 = vpow2.f32 %v728_v55  ;;  %v732_v0 = vmul.f32 1.442695, %v661_v32  ;;  %v617_v60 = vpop.xlane.xlu1 %616  ;;  %v572_v61 = vpop.xlane.xlu0 %571 }
 0x182   : > { %1587 = vpow2.f32 %v790_v34  ;;  %v692_v9 = vsub.f32 %v2016_v39, %v617_v60  ;;  %v693_v33 = vsub.f32 %v2022_v42, %v617_v60  ;;  %v662_v35 = vsub.f32 %v2026_v44, %v572_v61 }
 0x183   : > { %v2189_v8 = vpop.eup %1567  ;;  %1589 = vpow2.f32 %v792_v49  ;;  %v663_v38 = vsub.f32 %v2030_v46, %v572_v61 }
 0x184   : > { %v2192_v41 = vpop.eup %1569  ;;  %1591 = vpow2.f32 %v730_v52  ;;  %v794_v36 = vmul.f32 1.442695, %v692_v9  ;;  %v796_v21 = vmul.f32 1.442695, %v693_v33  ;;  %v734_v23 = vmul.f32 1.442695, %v662_v35 }
 0x185   : > { %1593 = vpow2.f32 %v732_v0  ;;  %v736_v20 = vmul.f32 1.442695, %v663_v38  ;;  %v620_v12 = vpop.xlane.xlu0 %619  ;;  %v575_v27 = vpop.xlane.xlu1 %574  ;;  %v846_v39 = vadd.f32 %v2192_v41, %v2189_v8 }
 0x186   : > { %1595 = vpow2.f32 %v794_v36  ;;  %v694_v42 = vsub.f32 %v2028_v45, %v620_v12  ;;  %v695_v44 = vsub.f32 %v2032_v47, %v620_v12  ;;  %v664_v46 = vsub.f32 %v2038_v50, %v575_v27 }
 0x187   : > { %v2199_v29 = vpop.eup %1571  ;;  %1597 = vpow2.f32 %v796_v21  ;;  %v665_v22 = vsub.f32 %v2044_v53, %v575_v27  ;;  %847 = vadd.xlane.f32.xlu0 %v846_v39 }
 0x188   : > { %v2202_v25 = vpop.eup %1573  ;;  %1599 = vpow2.f32 %v734_v23  ;;  %v798_v24 = vmul.f32 1.442695, %v694_v42  ;;  %v800_v55 = vmul.f32 1.442695, %v695_v44  ;;  %v738_v3 = vmul.f32 1.442695, %v664_v46 }
 0x189   : > { %v2204_v43 = vpop.eup %1575  ;;  %1601 = vpow2.f32 %v736_v20  ;;  %v740_v45 = vmul.f32 1.442695, %v665_v22  ;;  %v623_v15 = vpop.xlane.xlu1 %622  ;;  %v897_v46 = vadd.f32 %v2202_v25, %v2199_v29 }
 0x18a   : > { %v578_v47 = vpop.xlane.xlu0 %577  ;;  %v2206_v26 = vpop.eup %1577  ;;  %1603 = vpow2.f32 %v798_v24  ;;  %v696_v50 = vsub.f32 %v2040_v51, %v623_v15  ;;  %v697_v53 = vsub.f32 %v2046_v54, %v623_v15 }
 0x18b   : > { %v666_v28 = vsub.f32 %v2050_v56, %v578_v47  ;;  %v2211_v32 = vpop.eup %1579  ;;  %1605 = vpow2.f32 %v800_v55  ;;  %v667_v34 = vsub.f32 %v2054_v58, %v578_v47  ;;  %v894_v49 = vadd.f32 %v2206_v26, %v2204_v43 }
 0x18c   : > { %v2216_v52 = vpop.eup %1581  ;;  %1607 = vpow2.f32 %v738_v3  ;;  %v802_v0 = vmul.f32 1.442695, %v696_v50  ;;  %v804_v60 = vmul.f32 1.442695, %v697_v53 }
 0x18d   : > { %v742_v61 = vmul.f32 1.442695, %v666_v28  ;;  %v2218_v9 = vpop.eup %1583  ;;  %1609 = vpow2.f32 %v740_v45  ;;  %v744_v51 = vmul.f32 1.442695, %v667_v34  ;;  %895 = vadd.xlane.f32.xlu0 %v894_v49  ;;  %v581_v56 = vpop.xlane.xlu1 %580  ;;  %v849_v33 = vadd.f32 %v2216_v52, %v2211_v32 }
 0x18e   : > { %v626_v54 = vpop.xlane.xlu0 %625  ;;  %v2222_v58 = vpop.eup %1585  ;;  %1611 = vpow2.f32 %v802_v0  ;;  %v668_v36 = vsub.f32 %v2062_v62, %v581_v56  ;;  %v669_v23 = vsub.f32 %v2068_v1, %v581_v56 }
 0x18f   : > { %v698_v35 = vsub.f32 %v2052_v57, %v626_v54  ;;  %v699_v38 = vsub.f32 %v2056_v59, %v626_v54  ;;  %v2227_v21 = vpop.eup %1587  ;;  %1613 = vpow2.f32 %v804_v60  ;;  %v852_v20 = vadd.f32 %v2222_v58, %v2218_v9  ;;  %850 = vadd.xlane.f32.xlu1 %v849_v33 }
 0x190   : > { %v2232_v12 = vpop.eup %1589  ;;  %1615 = vpow2.f32 %v742_v61  ;;  %v746_v42 = vmul.f32 1.442695, %v668_v36  ;;  %v748_v59 = vmul.f32 1.442695, %v669_v23 }
 0x191   : > { %v806_v27 = vmul.f32 1.442695, %v698_v35  ;;  %v808_v39 = vmul.f32 1.442695, %v699_v38  ;;  %v2234_v57 = vpop.eup %1591  ;;  %1617 = vpow2.f32 %v744_v51  ;;  %853 = vadd.xlane.f32.xlu0 %v852_v20  ;;  %v629_v62 = vpop.xlane.xlu1 %628  ;;  %v900_v1 = vadd.f32 %v2232_v12, %v2227_v21 }
 0x192   : > { %v584_v44 = vpop.xlane.xlu0 %583  ;;  %v2240_v22 = vpop.eup %1593  ;;  %v700_v24 = vsub.f32 %v2064_v63, %v629_v62  ;;  %v701_v55 = vsub.f32 %v2070_v2, %v629_v62 }
 0x193   : > { %1619 = vpow2.f32 %v806_v27  ;;  %v670_v3 = vsub.f32 %v2074_v4, %v584_v44  ;;  %v2245_v45 = vpop.eup %1595  ;;  %v671_v15 = vsub.f32 %v2078_v6, %v584_v44  ;;  %898 = vadd.xlane.f32.xlu1 %v897_v46  ;;  %v855_v4 = vadd.f32 %v2240_v22, %v2234_v57 }
 0x194   : > { %1621 = vpow2.f32 %v808_v39  ;;  %v2248_v47 = vpop.eup %1597  ;;  %v810_v50 = vmul.f32 1.442695, %v700_v24  ;;  %v812_v53 = vmul.f32 1.442695, %v701_v55 }
 0x195   : > { %1623 = vpow2.f32 %v746_v42  ;;  %v750_v28 = vmul.f32 1.442695, %v670_v3  ;;  %v2250_v34 = vpop.eup %1599  ;;  %v752_v63 = vmul.f32 1.442695, %v671_v15  ;;  %901 = vadd.xlane.f32.xlu0 %v900_v1  ;;  %v587_v49 = vpop.xlane.xlu1 %586  ;;  %v903_v20 = vadd.f32 %v2248_v47, %v2245_v45 }
 0x196   : > { %1625 = vpow2.f32 %v748_v59  ;;  %v632_v2 = vpop.xlane.xlu0 %631  ;;  %v2254_v0 = vpop.eup %1601  ;;  %v672_v61 = vsub.f32 %v2086_v10, %v587_v49  ;;  %v673_v54 = vsub.f32 %v2092_v13, %v587_v49 }
 0x197   : > { %1627 = vpow2.f32 %v810_v50  ;;  %v702_v6 = vsub.f32 %v2076_v5, %v632_v2  ;;  %v703_v60 = vsub.f32 %v2080_v7, %v632_v2  ;;  %v2259_v51 = vpop.eup %1603  ;;  %v858_v56 = vadd.f32 %v2254_v0, %v2250_v34  ;;  %856 = vadd.xlane.f32.xlu1 %v855_v4 }
 0x198   : > { %1629 = vpow2.f32 %v812_v53  ;;  %v2264_v33 = vpop.eup %1605  ;;  %v754_v36 = vmul.f32 1.442695, %v672_v61  ;;  %v756_v7 = vmul.f32 1.442695, %v673_v54 }
 0x199   : > { %1631 = vpow2.f32 %v750_v28  ;;  %v814_v35 = vmul.f32 1.442695, %v702_v6  ;;  %v816_v38 = vmul.f32 1.442695, %v703_v60  ;;  %v2266_v5 = vpop.eup %1607  ;;  %859 = vadd.xlane.f32.xlu0 %v858_v56  ;;  %v635_v10 = vpop.xlane.xlu1 %634  ;;  %v906_v13 = vadd.f32 %v2264_v33, %v2259_v51 }
 0x19a   : > { %1633 = vpow2.f32 %v752_v63  ;;  %v590_v23 = vpop.xlane.xlu0 %589  ;;  %v2272_v27 = vpop.eup %1609  ;;  %v704_v39 = vsub.f32 %v2088_v11, %v635_v10  ;;  %v705_v42 = vsub.f32 %v2094_v14, %v635_v10 }
 0x19b   : > { %1635 = vpow2.f32 %v814_v35  ;;  %v674_v59 = vsub.f32 %v2098_v16, %v590_v23  ;;  %v2277_v62 = vpop.eup %1611  ;;  %v675_v44 = vsub.f32 %v2102_v18, %v590_v23  ;;  %904 = vadd.xlane.f32.xlu1 %v903_v20  ;;  %v861_v16 = vadd.f32 %v2272_v27, %v2266_v5  ;;  %v2631_v23 = vld [vmem:[#allocation6_spill] sm:$0xff] }
 0x19c   : > { %1637 = vpow2.f32 %v816_v38  ;;  %v2280_v1 = vpop.eup %1613  ;;  %v818_v46 = vmul.f32 1.442695, %v704_v39  ;;  %v820_v24 = vmul.f32 1.442695, %v705_v42 }
 0x19d   : > { %1639 = vpow2.f32 %v754_v36  ;;  %v758_v55 = vmul.f32 1.442695, %v674_v59  ;;  %v2282_v3 = vpop.eup %1615  ;;  %v760_v11 = vmul.f32 1.442695, %v675_v44  ;;  %907 = vadd.xlane.f32.xlu0 %v906_v13  ;;  %v593_v15 = vpop.xlane.xlu1 %592  ;;  %v909_v56 = vadd.f32 %v2280_v1, %v2277_v62 }
 0x19e   : > { %1641 = vpow2.f32 %v756_v7  ;;  %v638_v14 = vpop.xlane.xlu0 %637  ;;  %v2286_v50 = vpop.eup %1617  ;;  %v676_v28 = vsub.f32 %v2110_v30, %v593_v15  ;;  %v677_v2 = vsub.f32 %v2116_v37, %v593_v15 }
 0x19f   : > { %1643 = vpow2.f32 %v818_v46  ;;  %v706_v18 = vsub.f32 %v2100_v17, %v638_v14  ;;  %v707_v53 = vsub.f32 %v2104_v19, %v638_v14  ;;  %v864_v49 = vadd.f32 %v2286_v50, %v2282_v3  ;;  %862 = vadd.xlane.f32.xlu1 %v861_v16  ;;  %v2633_v14 = vld [vmem:[#allocation7_spill] sm:$0xff]  ;;  %v2634_v16 = vld [vmem:[#allocation8_spill] sm:$0xff] }
 0x1a0   : > { %v2291_v63 = vpop.eup %1619  ;;  %1645 = vpow2.f32 %v820_v24  ;;  %v762_v61 = vmul.f32 1.442695, %v676_v28  ;;  %v764_v19 = vmul.f32 1.442695, %v677_v2  ;;  %v2635_v28 = vld [vmem:[#allocation10_spill] sm:$0xff] }
 0x1a1   : > { %v2296_v4 = vpop.eup %1621  ;;  %1647 = vpow2.f32 %v758_v55  ;;  %v822_v6 = vmul.f32 1.442695, %v706_v18  ;;  %v824_v60 = vmul.f32 1.442695, %v707_v53  ;;  %865 = vadd.xlane.f32.xlu0 %v864_v49  ;;  %v641_v30 = vpop.xlane.xlu1 %640  ;;  %v2632_v55 = vld [vmem:[#allocation5_spill] sm:$0xff] }
 0x1a2   : > { %v2298_v17 = vpop.eup %1623  ;;  %1649 = vpow2.f32 %v760_v11  ;;  %v596_v54 = vpop.xlane.xlu0 %595  ;;  %v912_v37 = vadd.f32 %v2296_v4, %v2291_v63  ;;  %v708_v38 = vsub.f32 %v2112_v31, %v641_v30  ;;  %v709_v36 = vsub.f32 %v2118_v40, %v641_v30 }
 0x1a3   : > { %v2304_v35 = vpop.eup %1625  ;;  %1651 = vpow2.f32 %v822_v6  ;;  %v678_v7 = vsub.f32 %v2122_v48, %v596_v54  ;;  %v679_v13 = vsub.f32 %v2631_v23, %v596_v54  ;;  %910 = vadd.xlane.f32.xlu1 %v909_v56  ;;  %v2636_v23 = vld [vmem:[#allocation9_spill] sm:$0xff] }
 0x1a4   : > { %v2309_v10 = vpop.eup %1627  ;;  %1653 = vpow2.f32 %v824_v60  ;;  %v826_v39 = vmul.f32 1.442695, %v708_v38  ;;  %v828_v42 = vmul.f32 1.442695, %v709_v36  ;;  %v867_v48 = vadd.f32 %v2304_v35, %v2298_v17 }
 0x1a5   : > { %v2312_v20 = vpop.eup %1629  ;;  %1655 = vpow2.f32 %v762_v61  ;;  %v766_v59 = vmul.f32 1.442695, %v678_v7  ;;  %v768_v31 = vmul.f32 1.442695, %v679_v13  ;;  %913 = vadd.xlane.f32.xlu0 %v912_v37  ;;  %v599_v46 = vpop.xlane.xlu1 %598 }
 0x1a6   : > { %v2314_v44 = vpop.eup %1631  ;;  %1657 = vpow2.f32 %v764_v19  ;;  %v644_v40 = vpop.xlane.xlu0 %643  ;;  %v680_v18 = vsub.f32 %v2634_v16, %v599_v46  ;;  %v681_v2 = vsub.f32 %v2635_v28, %v599_v46  ;;  %v915_v36 = vadd.f32 %v2312_v20, %v2309_v10  ;;  %v2639_v46 = vld [vmem:[#allocation14_spill] sm:$0xff] }
 0x1a7   : > { %v2318_v24 = vpop.eup %1633  ;;  %1659 = vpow2.f32 %v826_v39  ;;  %v710_v11 = vsub.f32 %v2632_v55, %v644_v40  ;;  %v711_v15 = vsub.f32 %v2633_v14, %v644_v40  ;;  %868 = vadd.xlane.f32.xlu1 %v867_v48  ;;  %v2637_v39 = vld [vmem:[#allocation11_spill] sm:$0xff] }
 0x1a8   : > { %v2323_v53 = vpop.eup %1635  ;;  %1661 = vpow2.f32 %v828_v42  ;;  %v870_v49 = vadd.f32 %v2318_v24, %v2314_v44  ;;  %v770_v19 = vmul.f32 1.442695, %v680_v18  ;;  %v772_v54 = vmul.f32 1.442695, %v681_v2 }
 0x1a9   : > { %v2328_v6 = vpop.eup %1637  ;;  %1663 = vpow2.f32 %v766_v59  ;;  %v830_v60 = vmul.f32 1.442695, %v710_v11  ;;  %v832_v61 = vmul.f32 1.442695, %v711_v15  ;;  %v647_v37 = vpop.xlane.xlu1 %646  ;;  %v2638_v59 = vld [vmem:[#allocation12_spill] sm:$0xff] }
 0x1aa   : > { %v2330_v30 = vpop.eup %1639  ;;  %1665 = vpow2.f32 %v768_v31  ;;  %871 = vadd.xlane.f32.xlu0 %v870_v49  ;;  %v602_v56 = vpop.xlane.xlu0 %601  ;;  %v918_v38 = vadd.f32 %v2328_v6, %v2323_v53  ;;  %v712_v13 = vsub.f32 %v2636_v23, %v647_v37  ;;  %v713_v42 = vsub.f32 %v2637_v39, %v647_v37 }
 0x1ab   : > { %v2336_v7 = vpop.eup %1641  ;;  %1667 = vpow2.f32 %v830_v60  ;;  %v682_v40 = vsub.f32 %v2638_v59, %v602_v56  ;;  %v683_v48 = vsub.f32 %v2639_v46, %v602_v56  ;;  %916 = vadd.xlane.f32.xlu1 %v915_v36  ;;  %v2641_v56 = vld [vmem:[#allocation15_spill] sm:$0xff]  ;;  %v2642_v36 = vld [vmem:[#allocation16_spill] sm:$0xff] }
 0x1ac   : > { %v2341_v31 = vpop.eup %1643  ;;  %1669 = vpow2.f32 %v832_v61  ;;  %v834_v11 = vmul.f32 1.442695, %v712_v13  ;;  %v836_v14 = vmul.f32 1.442695, %v713_v42  ;;  %v873_v49 = vadd.f32 %v2336_v7, %v2330_v30  ;;  %v2640_v61 = vld [vmem:[#allocation13_spill] sm:$0xff] }
 0x1ad   : > { %v2344_v55 = vpop.eup %1645  ;;  %1671 = vpow2.f32 %v770_v19  ;;  %v774_v15 = vmul.f32 1.442695, %v682_v40  ;;  %v776_v18 = vmul.f32 1.442695, %v683_v48  ;;  %v605_v2 = vpop.xlane.xlu1 %604 }
 0x1ae   : > { %v2346_v16 = vpop.eup %1647  ;;  %1673 = vpow2.f32 %v772_v54  ;;  %919 = vadd.xlane.f32.xlu0 %v918_v38  ;;  %v650_v28 = vpop.xlane.xlu0 %649  ;;  %v684_v23 = vsub.f32 %v2642_v36, %v605_v2  ;;  %v2643_v54 = vld [vmem:[#allocation18_spill] sm:$0xff] }
 0x1af   : > { %v2350_v60 = vpop.eup %1649  ;;  %1675 = vpow2.f32 %v834_v11  ;;  %v714_v37 = vsub.f32 %v2640_v61, %v650_v28  ;;  %v715_v19 = vsub.f32 %v2641_v56, %v650_v28  ;;  %v685_v39 = vsub.f32 %v2643_v54, %v605_v2  ;;  %874 = vadd.xlane.f32.xlu1 %v873_v49  ;;  %v2644_v49 = vld [vmem:[#allocation17_spill] sm:$0xff] }
 0x1b0   : > { %v2355_v13 = vpop.eup %1651  ;;  %1677 = vpow2.f32 %v836_v14  ;;  %v876_v38 = vadd.f32 %v2350_v60, %v2346_v16  ;;  %v778_v46 = vmul.f32 1.442695, %v684_v23  ;;  %v921_v2 = vadd.f32 %v2344_v55, %v2341_v31 }
 0x1b1   : > { %v2360_v42 = vpop.eup %1653  ;;  %1679 = vpow2.f32 %v774_v15  ;;  %v838_v59 = vmul.f32 1.442695, %v714_v37  ;;  %v840_v40 = vmul.f32 1.442695, %v715_v19  ;;  %v780_v11 = vmul.f32 1.442695, %v685_v39  ;;  %v653_v28 = vpop.xlane.xlu1 %652 }
 0x1b2   : > { %v2362_v48 = vpop.eup %1655  ;;  %1681 = vpow2.f32 %v776_v18  ;;  %877 = vadd.xlane.f32.xlu0 %v876_v38  ;;  %v924_v14 = vadd.f32 %v2360_v42, %v2355_v13  ;;  %v716_v15 = vsub.f32 %v2644_v49, %v653_v28  ;;  %v2645_v37 = vld [vmem:[#allocation19_spill] sm:$0xff] }
 0x1b3   : > { %v2368_v61 = vpop.eup %1657  ;;  %1683 = vpow2.f32 %v838_v59  ;;  %v717_v56 = vsub.f32 %v2645_v37, %v653_v28  ;;  %922 = vadd.xlane.f32.xlu1 %v921_v2 }
 0x1b4   : > { %v2372_v19 = vpop.eup %1659  ;;  %1685 = vpow2.f32 %v840_v40  ;;  %v842_v36 = vmul.f32 1.442695, %v716_v15  ;;  %v879_v39 = vadd.f32 %v2368_v61, %v2362_v48 }
 0x1b5   : > { %v2374_v18 = vpop.eup %1661  ;;  %1687 = vpow2.f32 %v778_v46  ;;  %v844_v54 = vmul.f32 1.442695, %v717_v56 }
 0x1b6   : > { %v2376_v23 = vpop.eup %1663  ;;  %1689 = vpow2.f32 %v780_v11  ;;  %925 = vadd.xlane.f32.xlu0 %v924_v14  ;;  %v927_v14 = vadd.f32 %v2374_v18, %v2372_v19 }
 0x1b7   : > { %v2380_v38 = vpop.eup %1665  ;;  %880 = vadd.xlane.f32.xlu1 %v879_v39  ;;  %1691 = vpow2.f32 %v842_v36 }
 0x1b8   : > { %v2382_v59 = vpop.eup %1667  ;;  %v882_v40 = vadd.f32 %v2380_v38, %v2376_v23  ;;  %1693 = vpow2.f32 %v844_v54 }
 0x1b9   : > { %v2386_v28 = vpop.eup %1669 }
 0x1ba   : > { %2646 = vst [vmem:[#allocation6_spill] sm:$0xff] %v2386_v28  ;;  %v2388_v46 = vpop.eup %1671  ;;  %883 = vadd.xlane.f32.xlu0 %v882_v40  ;;  %v930_v11 = vadd.f32 %v2386_v28, %v2382_v59 }
 0x1bb   : > { %2647 = vst [vmem:[#allocation5_spill] sm:$0xff] %v2388_v46  ;;  %v2394_v2 = vpop.eup %1673  ;;  %928 = vadd.xlane.f32.xlu1 %v927_v14 }
 0x1bc   : > { %2648 = vst [vmem:[#allocation7_spill] sm:$0xff] %v2394_v2  ;;  %v2396_v49 = vpop.eup %1675  ;;  %v885_v56 = vadd.f32 %v2394_v2, %v2388_v46 }
 0x1bd   : > { %v2398_v15 = vpop.eup %1677 }
 0x1be   : > { %2649 = vst [vmem:[#allocation8_spill] sm:$0xff] %v2398_v15  ;;  %v2400_v37 = vpop.eup %1679  ;;  %931 = vadd.xlane.f32.xlu0 %v930_v11  ;;  %v933_v11 = vadd.f32 %v2398_v15, %v2396_v49 }
 0x1bf   : > { %v2404_v36 = vpop.eup %1681  ;;  %886 = vadd.xlane.f32.xlu1 %v885_v56 }
 0x1c0   : > { %2650 = vst [vmem:[#allocation10_spill] sm:$0xff] %v2404_v36  ;;  %v2406_v54 = vpop.eup %1683  ;;  %v888_v39 = vadd.f32 %v2404_v36, %v2400_v37 }
 0x1c1   : > { %2651 = vst [vmem:[#allocation9_spill] sm:$0xff] %v2406_v54  ;;  %v2410_v40 = vpop.eup %1685 }
 0x1c2   : > { %2652 = vst [vmem:[#allocation11_spill] sm:$0xff] %v2410_v40  ;;  %v2412_v28 = vpop.eup %1687  ;;  %889 = vadd.xlane.f32.xlu0 %v888_v39  ;;  %v936_v14 = vadd.f32 %v2410_v40, %v2406_v54 }
 0x1c3   : > { %2653 = vst [vmem:[#allocation12_spill] sm:$0xff] %v2412_v28  ;;  %v2418_v2 = vpop.eup %1689  ;;  %934 = vadd.xlane.f32.xlu1 %v933_v11 }
 0x1c4   : > { %2654 = vst [vmem:[#allocation14_spill] sm:$0xff] %v2418_v2  ;;  %v2420_v46 = vpop.eup %1691  ;;  %v891_v56 = vadd.f32 %v2418_v2, %v2412_v28 }
 0x1c5   : > { %2655 = vst [vmem:[#allocation13_spill] sm:$0xff] %v2420_v46  ;;  %v2424_v36 = vpop.eup %1693 }
 0x1c6   : > { %937 = vadd.xlane.f32.xlu0 %v936_v14  ;;  %2656 = vst [vmem:[#allocation15_spill] sm:$0xff] %v2424_v36  ;;  %v939_v39 = vadd.f32 %v2424_v36, %v2420_v46 }
 0x1c7   : > { %892 = vadd.xlane.f32.xlu1 %v891_v56 }
 0x1cb   : > { %940 = vadd.xlane.f32.xlu1 %v939_v39 }
 0x210   : > { %v848_v40 = vpop.xlane.xlu0 %847 }
 0x211   : > { %1695 = vrcp.f32 %v848_v40 }
 0x216   : > { %v896_v54 = vpop.xlane.xlu0 %895 }
 0x217   : > { %1697 = vrcp.f32 %v896_v54 }
 0x218   : > { %v851_v15 = vpop.xlane.xlu1 %850 }
 0x219   : > { %1699 = vrcp.f32 %v851_v15 }
 0x21a   : > { %v854_v11 = vpop.xlane.xlu0 %853 }
 0x21b   : > { %1701 = vrcp.f32 %v854_v11 }
 0x21c   : > { %v899_v14 = vpop.xlane.xlu1 %898 }
 0x21d   : > { %1703 = vrcp.f32 %v899_v14 }
 0x21e   : > { %v1696_v2 = vpop.eup %1695  ;;  %v902_v28 = vpop.xlane.xlu0 %901 }
 0x21f   : > { %v974_v56 = vmul.f32 %v1696_v2, %v2189_v8  ;;  %v975_v36 = vmul.f32 %v1696_v2, %v2192_v41  ;;  %1705 = vrcp.f32 %v902_v28 }
 0x220   : > { %v857_v39 = vpop.xlane.xlu1 %856 }
 0x221   : > { %v1450_v40 = vpack.c.bf16 %v975_v36, %v974_v56  ;;  %1707 = vrcp.f32 %v857_v39 }
 0x222   : > { %v860_v54 = vpop.xlane.xlu0 %859 }
 0x223   : > { %1230 = vst [vmem:[%s2433_s26] sm:$0xff] %v1450_v40  ;;  %1709 = vrcp.f32 %v860_v54 }
 0x224   : > { %v1698_v15 = vpop.eup %1697  ;;  %v905_v11 = vpop.xlane.xlu1 %904 }
 0x225   : > { %v1006_v14 = vmul.f32 %v1698_v15, %v2204_v43  ;;  %v1007_v46 = vmul.f32 %v1698_v15, %v2206_v26  ;;  %1711 = vrcp.f32 %v905_v11 }
 0x226   : > { %v1700_v8 = vpop.eup %1699  ;;  %v908_v41 = vpop.xlane.xlu0 %907 }
 0x227   : > { %v1466_v28 = vpack.c.bf16 %v1007_v46, %v1006_v14  ;;  %v976_v2 = vmul.f32 %v1700_v8, %v2211_v32  ;;  %v977_v36 = vmul.f32 %v1700_v8, %v2216_v52  ;;  %1713 = vrcp.f32 %v908_v41 }
 0x228   : > { %v1702_v56 = vpop.eup %1701  ;;  %v863_v39 = vpop.xlane.xlu1 %862 }
 0x229   : > { %1246 = vst [vmem:[%s2433_s26 + $0x80] sm:$0xff] %v1466_v28  ;;  %v978_v40 = vmul.f32 %v1702_v56, %v2218_v9  ;;  %v979_v43 = vmul.f32 %v1702_v56, %v2222_v58  ;;  %v1451_v54 = vpack.c.bf16 %v977_v36, %v976_v2  ;;  %1715 = vrcp.f32 %v863_v39 }
 0x22a   : > { %v1704_v26 = vpop.eup %1703  ;;  %v866_v15 = vpop.xlane.xlu0 %865 }
 0x22b   : > { %v1452_v11 = vpack.c.bf16 %v979_v43, %v978_v40  ;;  %1231 = vst [vmem:[%s2433_s26 + $0x8] sm:$0xff] %v1451_v54  ;;  %v1008_v32 = vmul.f32 %v1704_v26, %v2199_v29  ;;  %v1009_v52 = vmul.f32 %v1704_v26, %v2202_v25  ;;  %1717 = vrcp.f32 %v866_v15 }
 0x22c   : > { %v1706_v46 = vpop.eup %1705  ;;  %v911_v14 = vpop.xlane.xlu1 %910 }
 0x22d   : > { %1232 = vst [vmem:[%s2433_s26 + $0x10] sm:$0xff] %v1452_v11  ;;  %v1010_v9 = vmul.f32 %v1706_v46, %v2227_v21  ;;  %v1011_v58 = vmul.f32 %v1706_v46, %v2232_v12  ;;  %v1467_v8 = vpack.c.bf16 %v1009_v52, %v1008_v32  ;;  %1719 = vrcp.f32 %v911_v14 }
 0x22e   : > { %v1708_v41 = vpop.eup %1707  ;;  %v914_v28 = vpop.xlane.xlu0 %913 }
 0x22f   : > { %v1468_v2 = vpack.c.bf16 %v1011_v58, %v1010_v9  ;;  %1247 = vst [vmem:[%s2433_s26 + $0x88] sm:$0xff] %v1467_v8  ;;  %v980_v29 = vmul.f32 %v1708_v41, %v2234_v57  ;;  %v981_v25 = vmul.f32 %v1708_v41, %v2240_v22  ;;  %1721 = vrcp.f32 %v914_v28 }
 0x230   : > { %v1710_v36 = vpop.eup %1709  ;;  %v869_v56 = vpop.xlane.xlu1 %868 }
 0x231   : > { %1248 = vst [vmem:[%s2433_s26 + $0x90] sm:$0xff] %v1468_v2  ;;  %v982_v21 = vmul.f32 %v1710_v36, %v2250_v34  ;;  %v983_v12 = vmul.f32 %v1710_v36, %v2254_v0  ;;  %v1453_v39 = vpack.c.bf16 %v981_v25, %v980_v29  ;;  %1723 = vrcp.f32 %v869_v56 }
 0x232   : > { %v1712_v40 = vpop.eup %1711 }
 0x233   : > { %v872_v43 = vpop.xlane.xlu0 %871  ;;  %v1454_v54 = vpack.c.bf16 %v983_v12, %v982_v21  ;;  %1233 = vst [vmem:[%s2433_s26 + $0x18] sm:$0xff] %v1453_v39  ;;  %v1012_v57 = vmul.f32 %v1712_v40, %v2245_v45  ;;  %v1013_v22 = vmul.f32 %v1712_v40, %v2248_v47 }
 0x234   : > { %1725 = vrcp.f32 %v872_v43  ;;  %v1714_v26 = vpop.eup %1713  ;;  %v917_v15 = vpop.xlane.xlu1 %916 }
 0x235   : > { %1234 = vst [vmem:[%s2433_s26 + $0x20] sm:$0xff] %v1454_v54  ;;  %v1014_v34 = vmul.f32 %v1714_v26, %v2259_v51  ;;  %v1015_v0 = vmul.f32 %v1714_v26, %v2264_v33  ;;  %v1469_v11 = vpack.c.bf16 %v1013_v22, %v1012_v57  ;;  %1727 = vrcp.f32 %v917_v15 }
 0x236   : > { %v1716_v32 = vpop.eup %1715 }
 0x237   : > { %v920_v52 = vpop.xlane.xlu0 %919  ;;  %v1470_v46 = vpack.c.bf16 %v1015_v0, %v1014_v34  ;;  %1249 = vst [vmem:[%s2433_s26 + $0x98] sm:$0xff] %v1469_v11  ;;  %v984_v45 = vmul.f32 %v1716_v32, %v2266_v5  ;;  %v985_v47 = vmul.f32 %v1716_v32, %v2272_v27 }
 0x238   : > { %1729 = vrcp.f32 %v920_v52  ;;  %v1718_v14 = vpop.eup %1717  ;;  %v875_v9 = vpop.xlane.xlu1 %874 }
 0x239   : > { %1250 = vst [vmem:[%s2433_s26 + $0xa0] sm:$0xff] %v1470_v46  ;;  %v986_v51 = vmul.f32 %v1718_v14, %v2282_v3  ;;  %v987_v33 = vmul.f32 %v1718_v14, %v2286_v50  ;;  %v1455_v58 = vpack.c.bf16 %v985_v47, %v984_v45  ;;  %1731 = vrcp.f32 %v875_v9 }
 0x23a   : > { %v1720_v8 = vpop.eup %1719 }
 0x23b   : > { %v878_v41 = vpop.xlane.xlu0 %877  ;;  %v1456_v28 = vpack.c.bf16 %v987_v33, %v986_v51  ;;  %1235 = vst [vmem:[%s2433_s26 + $0x28] sm:$0xff] %v1455_v58  ;;  %v1016_v5 = vmul.f32 %v1720_v8, %v2277_v62  ;;  %v1017_v27 = vmul.f32 %v1720_v8, %v2280_v1 }
 0x23c   : > { %1733 = vrcp.f32 %v878_v41  ;;  %v1722_v2 = vpop.eup %1721  ;;  %v923_v29 = vpop.xlane.xlu1 %922 }
 0x23d   : > { %1236 = vst [vmem:[%s2433_s26 + $0x30] sm:$0xff] %v1456_v28  ;;  %v1018_v3 = vmul.f32 %v1722_v2, %v2291_v63  ;;  %v1019_v50 = vmul.f32 %v1722_v2, %v2296_v4  ;;  %v1471_v25 = vpack.c.bf16 %v1017_v27, %v1016_v5  ;;  %1735 = vrcp.f32 %v923_v29 }
 0x23e   : > { %v1724_v36 = vpop.eup %1723 }
 0x23f   : > { %v926_v56 = vpop.xlane.xlu0 %925  ;;  %v1472_v21 = vpack.c.bf16 %v1019_v50, %v1018_v3  ;;  %1251 = vst [vmem:[%s2433_s26 + $0xa8] sm:$0xff] %v1471_v25  ;;  %v988_v62 = vmul.f32 %v1724_v36, %v2298_v17  ;;  %v989_v1 = vmul.f32 %v1724_v36, %v2304_v35  ;;  %v2657_v36 = vld [vmem:[#allocation6_spill] sm:$0xff] }
 0x240   : > { %1737 = vrcp.f32 %v926_v56  ;;  %v881_v39 = vpop.xlane.xlu1 %880 }
 0x241   : > { %v1726_v12 = vpop.eup %1725  ;;  %1252 = vst [vmem:[%s2433_s26 + $0xb0] sm:$0xff] %v1472_v21  ;;  %v1457_v40 = vpack.c.bf16 %v989_v1, %v988_v62  ;;  %1739 = vrcp.f32 %v881_v39  ;;  %v2658_v62 = vld [vmem:[#allocation5_spill] sm:$0xff] }
 0x242   : > { %v990_v63 = vmul.f32 %v1726_v12, %v2314_v44  ;;  %v991_v4 = vmul.f32 %v1726_v12, %v2318_v24  ;;  %v1728_v43 = vpop.eup %1727  ;;  %v2659_v12 = vld [vmem:[#allocation7_spill] sm:$0xff] }
 0x243   : > { %v884_v54 = vpop.xlane.xlu0 %883  ;;  %1237 = vst [vmem:[%s2433_s26 + $0x38] sm:$0xff] %v1457_v40  ;;  %v1020_v17 = vmul.f32 %v1728_v43, %v2309_v10  ;;  %v1021_v35 = vmul.f32 %v1728_v43, %v2312_v20 }
 0x244   : > { %v1458_v57 = vpack.c.bf16 %v991_v4, %v990_v63  ;;  %1741 = vrcp.f32 %v884_v54  ;;  %v929_v26 = vpop.xlane.xlu1 %928  ;;  %v2660_v63 = vld [vmem:[#allocation10_spill] sm:$0xff] }
 0x245   : > { %v1730_v22 = vpop.eup %1729  ;;  %v1473_v15 = vpack.c.bf16 %v1021_v35, %v1020_v17  ;;  %1743 = vrcp.f32 %v929_v26 }
 0x246   : > { %1238 = vst [vmem:[%s2433_s26 + $0x40] sm:$0xff] %v1458_v57  ;;  %v1022_v44 = vmul.f32 %v1730_v22, %v2323_v53  ;;  %v1023_v24 = vmul.f32 %v1730_v22, %v2328_v6  ;;  %v1732_v34 = vpop.eup %1731  ;;  %v2661_v57 = vld [vmem:[#allocation8_spill] sm:$0xff]  ;;  %v2662_v22 = vld [vmem:[#allocation9_spill] sm:$0xff] }
 0x247   : > { %v932_v0 = vpop.xlane.xlu0 %931  ;;  %1253 = vst [vmem:[%s2433_s26 + $0xb8] sm:$0xff] %v1473_v15  ;;  %v992_v10 = vmul.f32 %v1732_v34, %v2330_v30  ;;  %v993_v20 = vmul.f32 %v1732_v34, %v2336_v7 }
 0x248   : > { %v1474_v11 = vpack.c.bf16 %v1023_v24, %v1022_v44  ;;  %1745 = vrcp.f32 %v932_v0  ;;  %v887_v52 = vpop.xlane.xlu1 %886  ;;  %v2663_v44 = vld [vmem:[#allocation11_spill] sm:$0xff]  ;;  %v2664_v0 = vld [vmem:[#allocation12_spill] sm:$0xff] }
 0x249   : > { %v1734_v32 = vpop.eup %1733  ;;  %v1459_v46 = vpack.c.bf16 %v993_v20, %v992_v10  ;;  %1747 = vrcp.f32 %v887_v52  ;;  %v2665_v10 = vld [vmem:[#allocation14_spill] sm:$0xff]  ;;  %v2666_v52 = vld [vmem:[#allocation13_spill] sm:$0xff] }
 0x24a   : > { %1254 = vst [vmem:[%s2433_s26 + $0xc0] sm:$0xff] %v1474_v11  ;;  %v994_v53 = vmul.f32 %v1734_v32, %v2346_v16  ;;  %v995_v6 = vmul.f32 %v1734_v32, %v2350_v60  ;;  %v1736_v45 = vpop.eup %1735 }
 0x24b   : > { %v890_v47 = vpop.xlane.xlu0 %889  ;;  %1239 = vst [vmem:[%s2433_s26 + $0x48] sm:$0xff] %v1459_v46  ;;  %v1024_v30 = vmul.f32 %v1736_v45, %v2341_v31  ;;  %v1025_v7 = vmul.f32 %v1736_v45, %v2344_v55 }
 0x24c   : > { %v1460_v14 = vpack.c.bf16 %v995_v6, %v994_v53  ;;  %1749 = vrcp.f32 %v890_v47  ;;  %v935_v51 = vpop.xlane.xlu1 %934  ;;  %v2667_v6 = vld [vmem:[#allocation15_spill] sm:$0xff] }
 0x24d   : > { %v1738_v9 = vpop.eup %1737  ;;  %v1475_v33 = vpack.c.bf16 %v1025_v7, %v1024_v30  ;;  %1751 = vrcp.f32 %v935_v51 }
 0x24e   : > { %1240 = vst [vmem:[%s2433_s26 + $0x50] sm:$0xff] %v1460_v14  ;;  %v1026_v16 = vmul.f32 %v1738_v9, %v2355_v13  ;;  %v1027_v60 = vmul.f32 %v1738_v9, %v2360_v42  ;;  %v1740_v58 = vpop.eup %1739 }
 0x24f   : > { %v938_v8 = vpop.xlane.xlu0 %937  ;;  %1255 = vst [vmem:[%s2433_s26 + $0xc8] sm:$0xff] %v1475_v33  ;;  %v996_v31 = vmul.f32 %v1740_v58, %v2362_v48  ;;  %v997_v55 = vmul.f32 %v1740_v58, %v2368_v61 }
 0x250   : > { %v1476_v41 = vpack.c.bf16 %v1027_v60, %v1026_v16  ;;  %1753 = vrcp.f32 %v938_v8  ;;  %v893_v5 = vpop.xlane.xlu1 %892 }
 0x251   : > { %v1742_v28 = vpop.eup %1741  ;;  %v1461_v27 = vpack.c.bf16 %v997_v55, %v996_v31  ;;  %1755 = vrcp.f32 %v893_v5 }
 0x252   : > { %1256 = vst [vmem:[%s2433_s26 + $0xd0] sm:$0xff] %v1476_v41  ;;  %v998_v13 = vmul.f32 %v1742_v28, %v2376_v23  ;;  %v999_v42 = vmul.f32 %v1742_v28, %v2380_v38  ;;  %v1744_v2 = vpop.eup %1743 }
 0x253   : > { %1241 = vst [vmem:[%s2433_s26 + $0x58] sm:$0xff] %v1461_v27  ;;  %v1028_v48 = vmul.f32 %v1744_v2, %v2372_v19  ;;  %v1029_v61 = vmul.f32 %v1744_v2, %v2374_v18 }
 0x254   : > { %v1462_v29 = vpack.c.bf16 %v999_v42, %v998_v13  ;;  %v941_v50 = vpop.xlane.xlu1 %940 }
 0x255   : > { %v1746_v3 = vpop.eup %1745  ;;  %v1477_v38 = vpack.c.bf16 %v1029_v61, %v1028_v48  ;;  %1757 = vrcp.f32 %v941_v50 }
 0x256   : > { %1242 = vst [vmem:[%s2433_s26 + $0x60] sm:$0xff] %v1462_v29  ;;  %v1030_v25 = vmul.f32 %v1746_v3, %v2382_v59  ;;  %v1031_v23 = vmul.f32 %v1746_v3, %v2657_v36  ;;  %v1748_v56 = vpop.eup %1747 }
 0x257   : > { %1257 = vst [vmem:[%s2433_s26 + $0xd8] sm:$0xff] %v1477_v38  ;;  %v1000_v1 = vmul.f32 %v1748_v56, %v2658_v62  ;;  %v1001_v19 = vmul.f32 %v1748_v56, %v2659_v12 }
 0x258   : > { %v1478_v21 = vpack.c.bf16 %v1031_v23, %v1030_v25 }
 0x259   : > { %v1750_v39 = vpop.eup %1749  ;;  %v1463_v4 = vpack.c.bf16 %v1001_v19, %v1000_v1 }
 0x25a   : > { %1258 = vst [vmem:[%s2433_s26 + $0xe0] sm:$0xff] %v1478_v21  ;;  %v1002_v18 = vmul.f32 %v1750_v39, %v2400_v37  ;;  %v1003_v59 = vmul.f32 %v1750_v39, %v2660_v63  ;;  %v1752_v40 = vpop.eup %1751 }
 0x25b   : > { %1243 = vst [vmem:[%s2433_s26 + $0x68] sm:$0xff] %v1463_v4  ;;  %v1032_v54 = vmul.f32 %v1752_v40, %v2396_v49  ;;  %v1033_v17 = vmul.f32 %v1752_v40, %v2661_v57 }
 0x25c   : > { %v1464_v43 = vpack.c.bf16 %v1003_v59, %v1002_v18 }
 0x25d   : > { %v1754_v35 = vpop.eup %1753  ;;  %v1479_v24 = vpack.c.bf16 %v1033_v17, %v1032_v54 }
 0x25e   : > { %1244 = vst [vmem:[%s2433_s26 + $0x70] sm:$0xff] %v1464_v43  ;;  %v1034_v26 = vmul.f32 %v1754_v35, %v2662_v22  ;;  %v1035_v37 = vmul.f32 %v1754_v35, %v2663_v44  ;;  %v1756_v15 = vpop.eup %1755 }
 0x25f   : > { %1259 = vst [vmem:[%s2433_s26 + $0xe8] sm:$0xff] %v1479_v24  ;;  %v1004_v11 = vmul.f32 %v1756_v15, %v2664_v0  ;;  %v1005_v20 = vmul.f32 %v1756_v15, %v2665_v10 }
 0x260   : > { %v1480_v34 = vpack.c.bf16 %v1035_v37, %v1034_v26 }
 0x261   : > { %v1465_v49 = vpack.c.bf16 %v1005_v20, %v1004_v11 }
 0x262   : > { %1260 = vst [vmem:[%s2433_s26 + $0xf0] sm:$0xff] %v1480_v34  ;;  %v1758_v32 = vpop.eup %1757 }
 0x263   : > { %1245 = vst [vmem:[%s2433_s26 + $0x78] sm:$0xff] %v1465_v49  ;;  %v1036_v53 = vmul.f32 %v1758_v32, %v2666_v52  ;;  %v1037_v46 = vmul.f32 %v1758_v32, %v2667_v6 }
 0x265   : > { %v1481_v45 = vpack.c.bf16 %v1037_v46, %v1036_v53 }
 0x267   : > { %1261 = vst [vmem:[%s2433_s26 + $0xf8] sm:$0xff] %v1481_v45 }
 0x268   : > { %1772 = shalt.err (!%p1769_p5)
}
 0x269   : > { %s1773_s8 = scalar_lea.hbm %s2533_s3, 4096  ;;  %s1777_s18 = scalar_lea.hbm %s2587_s2, 8192 }
 0x26a   : > { %p1774_p6 = scmp.ne.s32.totalorder %s2533_s3, %s1773_s8  ;;  %p1778_p10 = scmp.lt.s32.totalorder %s2533_s3, %s2587_s2 }
 0x26b   : > { %p1779_p11 = scmp.lt.s32.totalorder %s1777_s18, %s1773_s8 }
 0x26c   : > { %p1775_p7 = pnand %p1774_p6, %p1896_p4 }
 0x26d   : > { %p1780_p12 = por %p1779_p11, %p1778_p10 }
 0x26e   : > { %p1776_p9 = pneg %p1775_p7 }
 0x270   : > { %p1781_p13 = pnand %p1780_p12, %p1776_p9 }
 0x272   : > { %1784 = shalt.err (!%p1781_p13)
}
 0x273   : > { %s1839_s24 = smov 128   ;;  %s1840_s25 = smov 8  }
 0x274   : > { %1487 = dma.vmem_to_hbm [thread:$0]  (%p1896_p4), %s2535_s28, 4096, %s2533_s3, %s2540_s12, %s1839_s24, %s1839_s24, %s1840_s25  }
 0x275 PF: > { %p1493_p0 = scmp.ge.s32.totalorder %s1835_s14, 2  ;;  %s1294_s26 = sand.u32 1, %s1815_s9  }
 0x276   : > { %s1295_s27 = scalar_lea.sflag [#allocation3], %s1294_s26 }
 0x277   : > { %p1490_p1 = pnand %p1493_p0, %p1903_p8 }
 0x279   : > { %p1491_p2 = pneg %p1490_p1 }
 0x27b   : > { %1810 = dma.done.wait (%p1491_p2), %s1295_s27, 4096  }
 0x27c   : > { %1812 = vsyncadd (%p1491_p2), %s1295_s27, 4294963200  ;;  %s15_s14 = sadd.s32 1, %s1835_s14   ;;  %s2668_s9 = smov %s1819_s10 }
 0x27d   : > { %p12_p3 = scmp.ge.s32.totalorder %s15_s14, 4   ;;  %s2669_s10 = smov %s1823_s11 }
 0x27e   : > { %s2670_s11 = smov %s1909_s22  ;;  %s2671_s12 = smov %s1831_s13 }
 0x27f   : > { %s2672_s13 = smov %s2674_s17  ;;  %14 = sbr.rel (!%p12_p3) target bundleno = 4 (0x4), region = 66 }
 0x284   :  { %1300 = vsyncpa [#allocation3], 1 }
 0x285   :  { %1302 = vsyncpa [#allocation3 + $0x1], 1 }

</bundles_post_ra>
